<compile_context>
chip_gen: v5e
topology: v5e:2x2
jax: 0.10.0
libtpu: 0.0.40
codegen_flags: <defaults>
</compile_context>

<pallas_src>
import functools

import jax
import jax.numpy as jnp
from jax.experimental import pallas as pl
from jax.experimental.pallas import tpu as pltpu

LANE = 128
NEG_INF = -1e30


def _round_up(x, m):
    return ((x + m - 1) // m) * m


# ----------------------------------------------------------------------------
# Fused Pallas kernel: encoder -> pool -> decoder -> generator -> log-softmax
# ----------------------------------------------------------------------------
def _fused_forward_kernel(emb_src_ref, emb_tgt_ref, ctx_mask_ref, inv_cnt_ref,
                          enc_w_ref, enc_b_ref, dec_w_ref, dec_b_ref,
                          gen_w_ref, gen_b_ref,
                          dec_out_ref, logp_ref):
    # ---- encoder: tanh(emb_src @ W_enc + b_enc); mask already folded into W ----
    enc = jnp.tanh(
        jnp.dot(emb_src_ref[...], enc_w_ref[...],
                preferred_element_type=jnp.float32) + enc_b_ref[...])       # [Ms, Hp] f32

    # ---- length-masked mean pool broadcast to target rows: ONE bf16 matmul ----
    # ctx_mask is a 0/1 validity matrix (bf16, MXU fast path); the exact f32
    # 1/count scale is applied after accumulation to keep the mean exact.
    ctx_rows = inv_cnt_ref[...] * jnp.dot(
        ctx_mask_ref[...], enc.astype(jnp.bfloat16),
        preferred_element_type=jnp.float32)                                 # [Mt, Hp] f32

    # ---- decoder: tanh((emb_tgt + ctx) @ W_dec + b_dec) ----
    dec_in = (emb_tgt_ref[...].astype(jnp.float32) + ctx_rows).astype(jnp.bfloat16)
    dec = jnp.tanh(
        jnp.dot(dec_in, dec_w_ref[...],
                preferred_element_type=jnp.float32) + dec_b_ref[...])       # [Mt, Hp] f32
    dec_out_ref[...] = dec.astype(dec_out_ref.dtype)                        # bf16 writeback

    # ---- generator + fused log-softmax (padded vocab cols have -inf bias) ----
    # TODO(synk): at real NMT sizes (V~32k) grid-tile the vocab axis and turn
    # this into a running-max / running-sum accumulator (pl.when init on tile 0,
    # normalize on the last tile); add a "parallel" Mt grid axis for v7x's 2 TCs
    # and raise vmem_limit_bytes on v5e/v6e.
    logits = jnp.dot(dec.astype(jnp.bfloat16), gen_w_ref[...],
                     preferred_element_type=jnp.float32) + gen_b_ref[...]   # [Mt, Vp] f32
    m = jnp.max(logits, axis=-1, keepdims=True)
    z = logits - m
    lse = jnp.log(jnp.sum(jnp.exp(z), axis=-1, keepdims=True))
    logp_ref[...] = z - lse


def fused_masked_forward(emb_src, emb_tgt, ctx_mask, inv_cnt,
                         enc_w, enc_b, dec_w, dec_b, gen_w, gen_b):
    Mt, Hp = emb_tgt.shape
    Vp = gen_w.shape[1]

    vmem = pl.BlockSpec(memory_space=pltpu.MemorySpace.VMEM)

    # No grid: single invocation, full arrays resident in VMEM, no pipeline
    # machinery / double buffers (everything here fits comfortably).
    return pl.pallas_call(
        _fused_forward_kernel,
        out_shape=(jax.ShapeDtypeStruct((Mt, Hp), jnp.bfloat16),
                   jax.ShapeDtypeStruct((Mt, Vp), jnp.float32)),
        in_specs=[vmem] * 10,
        out_specs=(vmem, vmem),
    )(emb_src, emb_tgt, ctx_mask, inv_cnt,
      enc_w, enc_b, dec_w, dec_b, gen_w, gen_b)


# ----------------------------------------------------------------------------
# Synthetic "pretrained" model + pruning masks (deterministic)
# ----------------------------------------------------------------------------
def init_params(key, vocab_src, vocab_tgt, hidden):
    ks = jax.random.split(key, 8)
    scale = 0.1
    return {
        "encoder.embedding": scale * jax.random.normal(ks[0], (vocab_src, hidden), jnp.float32),
        "encoder.weight":    scale * jax.random.normal(ks[1], (hidden, hidden), jnp.float32),
        "encoder.bias":      scale * jax.random.normal(ks[2], (hidden,), jnp.float32),
        "decoder.embedding": scale * jax.random.normal(ks[3], (vocab_tgt, hidden), jnp.float32),
        "decoder.weight":    scale * jax.random.normal(ks[4], (hidden, hidden), jnp.float32),
        "decoder.bias":      scale * jax.random.normal(ks[5], (hidden,), jnp.float32),
        "generator.weight":  scale * jax.random.normal(ks[6], (hidden, vocab_tgt), jnp.float32),
        "generator.bias":    scale * jax.random.normal(ks[7], (vocab_tgt,), jnp.float32),
    }


def make_masks(params, group_dict, sparsity_per_group=0.5):
    """Mirror of MaskedModel.generate_mask + change_mask: per-group magnitude
    pruning. Masks are float32 {0,1} so they can be folded into the weights."""
    map_dict = {}
    for g, names in group_dict.items():
        for n in names:
            map_dict[n] = g
    thresholds = {}
    for g, names in group_dict.items():
        flat = jnp.concatenate([jnp.abs(params[n]).reshape(-1) for n in names])
        thresholds[g] = jnp.quantile(flat, sparsity_per_group)
    masks = {}
    for name, p in params.items():
        if name in map_dict:
            masks[name] = (jnp.abs(p) > thresholds[map_dict[name]]).astype(jnp.float32)
        else:
            masks[name] = jnp.ones_like(p)  # not in any group -> unmasked
    return masks


# ----------------------------------------------------------------------------
# Static preprocessing: fold masks into weights, pad lanes to 128, cast bf16.
# Done once, outside jit (masks and params are static per forward).
# ----------------------------------------------------------------------------
def preprocess_params(params, masks):
    H = params["encoder.weight"].shape[0]
    V = params["generator.weight"].shape[1]
    Hp = _round_up(H, LANE)
    Vp = _round_up(V, LANE)

    def pad2(a, rows, cols, dtype=jnp.float32):
        out = jnp.zeros((rows, cols), dtype)
        return out.at[:a.shape[0], :a.shape[1]].set(a.astype(dtype))

    pp = {
        # embedding tables: masked, hidden dim padded to 128, stored bf16
        # (halves gather HBM bytes + kernel input DMA; MXU consumes bf16 anyway)
        "enc_emb": pad2(params["encoder.embedding"] * masks["encoder.embedding"],
                        params["encoder.embedding"].shape[0], Hp, jnp.bfloat16),
        "dec_emb": pad2(params["decoder.embedding"] * masks["decoder.embedding"],
                        params["decoder.embedding"].shape[0], Hp, jnp.bfloat16),
        # pre-masked, lane-padded, bf16 weights for the MXU
        "enc_w": pad2(params["encoder.weight"] * masks["encoder.weight"], Hp, Hp, jnp.bfloat16),
        "dec_w": pad2(params["decoder.weight"] * masks["decoder.weight"], Hp, Hp, jnp.bfloat16),
        "gen_w": pad2(params["generator.weight"] * masks["generator.weight"], Hp, Vp, jnp.bfloat16),
        # biases in f32; padded hidden lanes -> 0, padded vocab lanes -> -inf
        "enc_b": pad2(params["encoder.bias"].reshape(1, H), 1, Hp),
        "dec_b": pad2(params["decoder.bias"].reshape(1, H), 1, Hp),
        "gen_b": jnp.full((1, Vp), NEG_INF, jnp.float32).at[0, :V].set(
            params["generator.bias"].astype(jnp.float32)),
    }
    return pp, H, V


# ----------------------------------------------------------------------------
# Forward pass of the masked model  (== MaskedModel.forward)
# ----------------------------------------------------------------------------
def masked_model_forward(pp, src, tgt, lengths, *, H, V):
    # TODO(synk): the real OpenNMT decoder has attention + recurrent state
    # (dec_state); here the decoder conditions on a length-masked mean of the
    # encoder states instead.
    # TODO(synk): fuse the embedding gathers into the kernel (scalar-prefetched
    # token ids + pl.Element row index_map / manual DMA gather) to drop the
    # wrapper-side jnp.take HBM round trip at real sizes.
    B, Ts = src.shape
    _, Tt = tgt.shape
    Hp = pp["enc_w"].shape[0]

    # embedding gathers stay in plain JAX; tables are already masked + padded + bf16.
    emb_src = jnp.take(pp["enc_emb"], src.reshape(-1), axis=0)               # [B*Ts, Hp] bf16
    emb_tgt = jnp.take(pp["dec_emb"], tgt.reshape(-1), axis=0)               # [B*Tt, Hp] bf16

    # length-masked mean pool, broadcast to target rows, as ONE matrix:
    #   ctx_mask[b*Tt + t, b*Ts + s] = 1 if s < lengths[b] else 0   (bf16, exact 0/1)
    #   inv_cnt[b*Tt + t, 0]         = 1 / lengths[b]               (f32, exact scale)
    pos = jnp.arange(Ts)[None, :]
    valid = (pos < lengths[:, None]).astype(jnp.float32)                     # [B, Ts]
    cnt = jnp.maximum(jnp.sum(valid, axis=1, keepdims=True), 1.0)            # [B, 1]
    block = jnp.eye(B, dtype=jnp.float32)[:, :, None] * valid[:, None, :]    # [B, B, Ts]
    ctx_mask = jnp.repeat(block.reshape(B, B * Ts), Tt, axis=0)              # [B*Tt, B*Ts]
    ctx_mask = ctx_mask.astype(jnp.bfloat16)
    inv_cnt = jnp.repeat(1.0 / cnt, Tt, axis=0)                              # [B*Tt, 1] f32

    dec_pad, logp_pad = fused_masked_forward(
        emb_src, emb_tgt, ctx_mask, inv_cnt,
        pp["enc_w"], pp["enc_b"], pp["dec_w"], pp["dec_b"],
        pp["gen_w"], pp["gen_b"])

    outputs = dec_pad[:, :H].astype(jnp.float32).reshape(B, Tt, H)
    log_probs = logp_pad[:, :V].reshape(B, Tt, V)   # slice is mandatory: padded cols are ~-1e30
    return outputs, log_probs


# ----------------------------------------------------------------------------
# main
# ----------------------------------------------------------------------------
if __name__ == "__main__":
    B, Ts, Tt, H = 2, 8, 8, 32
    VOCAB_SRC, VOCAB_TGT = 64, 64

    key = jax.random.PRNGKey(0)
    kp, ks, kt, kl = jax.random.split(key, 4)

    params = init_params(kp, VOCAB_SRC, VOCAB_TGT, H)
    group_dict = {
        "encoder_group": ["encoder.embedding", "encoder.weight"],
        "decoder_group": ["decoder.embedding", "decoder.weight"],
        "generator_group": ["generator.weight"],
    }
    masks = make_masks(params, group_dict, sparsity_per_group=0.5)

    # fold masks + pad + cast once (static w.r.t. the forward pass)
    pp, H_, V_ = preprocess_params(params, masks)

    src = jax.random.randint(ks, (B, Ts), 0, VOCAB_SRC, dtype=jnp.int32)
    tgt = jax.random.randint(kt, (B, Tt), 0, VOCAB_TGT, dtype=jnp.int32)
    lengths = jnp.array([Ts, Ts - 3], dtype=jnp.int32)

    fwd = jax.jit(functools.partial(masked_model_forward, H=H_, V=V_))
    outputs, log_probs = fwd(pp, src, tgt, lengths)
    jax.block_until_ready((outputs, log_probs))

    assert outputs.shape == (B, Tt, H)
    assert log_probs.shape == (B, Tt, VOCAB_TGT)
    # log-softmax rows should sum to ~1 in prob space
    assert jnp.allclose(jnp.sum(jnp.exp(log_probs), axis=-1), 1.0, atol=1e-4)

    print("KERNEL_OK")
</pallas_src>

<mosaic_0001>
module attributes {stable_mosaic.version = 11 : i64} {
  func.func @_fused_forward_kernel(%arg0: memref<16x128xbf16, #tpu.memory_space<vmem>>, %arg1: memref<16x128xbf16, #tpu.memory_space<vmem>>, %arg2: memref<16x16xbf16, #tpu.memory_space<vmem>>, %arg3: memref<16x1xf32, #tpu.memory_space<vmem>>, %arg4: memref<128x128xbf16, #tpu.memory_space<vmem>>, %arg5: memref<1x128xf32, #tpu.memory_space<vmem>>, %arg6: memref<128x128xbf16, #tpu.memory_space<vmem>>, %arg7: memref<1x128xf32, #tpu.memory_space<vmem>>, %arg8: memref<128x128xbf16, #tpu.memory_space<vmem>>, %arg9: memref<1x128xf32, #tpu.memory_space<vmem>>, %arg10: memref<16x128xbf16, #tpu.memory_space<vmem>>, %arg11: memref<16x128xf32, #tpu.memory_space<vmem>>) attributes {dimension_semantics = [], scalar_prefetch = 0 : i64, scratch_operands = 0 : i64, tpu.core_type = #tpu.core_type<tc>} {
    %c0 = arith.constant 0 : index
    %c0_0 = arith.constant 0 : index
    %0 = vector.load %arg0[%c0, %c0_0] : memref<16x128xbf16, #tpu.memory_space<vmem>>, vector<16x128xbf16>
    %c0_1 = arith.constant 0 : index
    %c0_2 = arith.constant 0 : index
    %1 = vector.load %arg4[%c0_1, %c0_2] : memref<128x128xbf16, #tpu.memory_space<vmem>>, vector<128x128xbf16>
    %cst = arith.constant dense<0.000000e+00> : vector<16x128xf32>
    %2 = tpu.matmul %0, %1, %cst {dimension_numbers = #tpu.dot_dimension_numbers<[1], [0], [0], [1], [0, 0, 1, 1], [], []>} : vector<16x128xbf16>, vector<128x128xbf16>, vector<16x128xf32> -> vector<16x128xf32>
    %c0_3 = arith.constant 0 : index
    %c0_4 = arith.constant 0 : index
    %3 = vector.load %arg5[%c0_3, %c0_4] : memref<1x128xf32, #tpu.memory_space<vmem>>, vector<1x128xf32>
    %4 = vector.broadcast %3 : vector<1x128xf32> to vector<16x128xf32>
    %5 = arith.addf %2, %4 : vector<16x128xf32>
    %6 = math.tanh %5 : vector<16x128xf32>
    %c0_5 = arith.constant 0 : index
    %c0_6 = arith.constant 0 : index
    %7 = vector.load %arg3[%c0_5, %c0_6] : memref<16x1xf32, #tpu.memory_space<vmem>>, vector<16x1xf32>
    %c0_7 = arith.constant 0 : index
    %c0_8 = arith.constant 0 : index
    %8 = vector.load %arg2[%c0_7, %c0_8] : memref<16x16xbf16, #tpu.memory_space<vmem>>, vector<16x16xbf16>
    %9 = arith.truncf %6 : vector<16x128xf32> to vector<16x128xbf16>
    %cst_9 = arith.constant dense<0.000000e+00> : vector<16x128xf32>
    %10 = tpu.matmul %8, %9, %cst_9 {dimension_numbers = #tpu.dot_dimension_numbers<[1], [0], [0], [1], [0, 0, 1, 1], [], []>} : vector<16x16xbf16>, vector<16x128xbf16>, vector<16x128xf32> -> vector<16x128xf32>
    %11 = vector.broadcast %7 : vector<16x1xf32> to vector<16x128xf32>
    %12 = arith.mulf %11, %10 : vector<16x128xf32>
    %c0_10 = arith.constant 0 : index
    %c0_11 = arith.constant 0 : index
    %13 = vector.load %arg1[%c0_10, %c0_11] : memref<16x128xbf16, #tpu.memory_space<vmem>>, vector<16x128xbf16>
    %14 = arith.extf %13 : vector<16x128xbf16> to vector<16x128xf32>
    %15 = arith.addf %14, %12 : vector<16x128xf32>
    %16 = arith.truncf %15 : vector<16x128xf32> to vector<16x128xbf16>
    %c0_12 = arith.constant 0 : index
    %c0_13 = arith.constant 0 : index
    %17 = vector.load %arg6[%c0_12, %c0_13] : memref<128x128xbf16, #tpu.memory_space<vmem>>, vector<128x128xbf16>
    %cst_14 = arith.constant dense<0.000000e+00> : vector<16x128xf32>
    %18 = tpu.matmul %16, %17, %cst_14 {dimension_numbers = #tpu.dot_dimension_numbers<[1], [0], [0], [1], [0, 0, 1, 1], [], []>} : vector<16x128xbf16>, vector<128x128xbf16>, vector<16x128xf32> -> vector<16x128xf32>
    %c0_15 = arith.constant 0 : index
    %c0_16 = arith.constant 0 : index
    %19 = vector.load %arg7[%c0_15, %c0_16] : memref<1x128xf32, #tpu.memory_space<vmem>>, vector<1x128xf32>
    %20 = vector.broadcast %19 : vector<1x128xf32> to vector<16x128xf32>
    %21 = arith.addf %18, %20 : vector<16x128xf32>
    %22 = math.tanh %21 : vector<16x128xf32>
    %23 = arith.truncf %22 : vector<16x128xf32> to vector<16x128xbf16>
    %c0_17 = arith.constant 0 : index
    %c0_18 = arith.constant 0 : index
    %24 = vector.load %arg10[%c0_17, %c0_18] : memref<16x128xbf16, #tpu.memory_space<vmem>>, vector<16x128xbf16>
    tpu.vector_store %arg10[%c0_17, %c0_18], %23 {strides = array<i32>} : memref<16x128xbf16, #tpu.memory_space<vmem>>, vector<16x128xbf16>,
    %25 = arith.truncf %22 : vector<16x128xf32> to vector<16x128xbf16>
    %c0_19 = arith.constant 0 : index
    %c0_20 = arith.constant 0 : index
    %26 = vector.load %arg8[%c0_19, %c0_20] : memref<128x128xbf16, #tpu.memory_space<vmem>>, vector<128x128xbf16>
    %cst_21 = arith.constant dense<0.000000e+00> : vector<16x128xf32>
    %27 = tpu.matmul %25, %26, %cst_21 {dimension_numbers = #tpu.dot_dimension_numbers<[1], [0], [0], [1], [0, 0, 1, 1], [], []>} : vector<16x128xbf16>, vector<128x128xbf16>, vector<16x128xf32> -> vector<16x128xf32>
    %c0_22 = arith.constant 0 : index
    %c0_23 = arith.constant 0 : index
    %28 = vector.load %arg9[%c0_22, %c0_23] : memref<1x128xf32, #tpu.memory_space<vmem>>, vector<1x128xf32>
    %29 = vector.broadcast %28 : vector<1x128xf32> to vector<16x128xf32>
    %30 = arith.addf %27, %29 : vector<16x128xf32>
    %cst_24 = arith.constant dense<0xFF800000> : vector<16xf32>
    %31 = vector.multi_reduction <maximumf>, %30, %cst_24 [1] : vector<16x128xf32> to vector<16xf32>
    %32 = vector.shape_cast %31 : vector<16xf32> to vector<16x1xf32>
    %33 = vector.broadcast %32 : vector<16x1xf32> to vector<16x128xf32>
    %34 = arith.subf %30, %33 : vector<16x128xf32>
    %35 = math.exp %34 : vector<16x128xf32>
    %cst_25 = arith.constant dense<0.000000e+00> : vector<16xf32>
    %36 = vector.multi_reduction <add>, %35, %cst_25 [1] : vector<16x128xf32> to vector<16xf32>
    %37 = vector.shape_cast %36 : vector<16xf32> to vector<16x1xf32>
    %38 = math.log %37 : vector<16x1xf32>
    %39 = vector.broadcast %38 : vector<16x1xf32> to vector<16x128xf32>
    %40 = arith.subf %34, %39 : vector<16x128xf32>
    %c0_26 = arith.constant 0 : index
    %c0_27 = arith.constant 0 : index
    %41 = vector.load %arg11[%c0_26, %c0_27] : memref<16x128xf32, #tpu.memory_space<vmem>>, vector<16x128xf32>
    tpu.vector_store %arg11[%c0_26, %c0_27], %40 {strides = array<i32>} : memref<16x128xf32, #tpu.memory_space<vmem>>, vector<16x128xf32>,
    return
  }
}

</mosaic_0001>

<bundles_post_ra>
// kernel: masked_model_forward.1
= control target key start
LH: loop header
LB: loop body
LE: loop exit
PB: predicated region body
PF: predicated region fallthrough
CT: control target
= control target key end

     0   :  { %v544_v11 = vmov 0   ;;  %vm140_vm0 = vcmask 130048   ;;  %s710_s4 = inlined_call_operand.vmem [shape: bf16[128,128], index: 4, kind: input, shape index: {}]   ;;  %s711_s5 = inlined_call_operand.vmem [shape: f32[1,128], index: 5, kind: input, shape index: {}]   ;;  %s712_s0 = inlined_call_operand.vmem [shape: bf16[16,128], index: 0, kind: input, shape index: {}]   ;;  %s713_s3 = inlined_call_operand.vmem [shape: f32[16,1], index: 3, kind: input, shape index: {}]   ;;  %s714_s6 = inlined_call_operand.vmem [shape: bf16[128,128], index: 6, kind: input, shape index: {}]   ;;  %s715_s2 = inlined_call_operand.vmem [shape: bf16[16,16], index: 2, kind: input, shape index: {}]   ;;  %s716_s7 = inlined_call_operand.vmem [shape: f32[1,128], index: 7, kind: input, shape index: {}]   ;;  %s717_s8 = inlined_call_operand.vmem [shape: bf16[128,128], index: 8, kind: input, shape index: {}]   ;;  %s718_s1 = inlined_call_operand.vmem [shape: bf16[16,128], index: 1, kind: input, shape index: {}]   ;;  %s719_s9 = inlined_call_operand.vmem [shape: f32[1,128], index: 9, kind: input, shape index: {}]   ;;  %s720_s10 = inlined_call_operand.vmem [shape: bf16[16,128], index: 10, kind: output, shape index: {0}]   ;;  %s721_s11 = inlined_call_operand.vmem [shape: f32[16,128], index: 11, kind: output, shape index: {1}]  }
   0x1   :  { %v496_v0 = vld [vmem:[%s710_s4 + $0x38] sm:$0xff]  ;;  %v495_v1 = vld [vmem:[%s710_s4 + $0x30] sm:$0xff]  ;;  %v494_v2 = vld [vmem:[%s710_s4 + $0x28] sm:$0xff]  ;;  %524 = vset.pattern.permute.xlu0 %v544_v11 }
   0x2   :  { %114 = vmatpush.bf16.msra.mxu0 %v496_v0  ;;  %v493_v3 = vld [vmem:[%s710_s4 + $0x20] sm:$0xff]  ;;  %v492_v4 = vld [vmem:[%s710_s4 + $0x18] sm:$0xff]  ;;  %v491_v5 = vld [vmem:[%s710_s4 + $0x10] sm:$0xff] }
   0x3   :  { %v490_v6 = vld [vmem:[%s710_s4 + $0x8] sm:$0xff]  ;;  %v489_v7 = vld [vmem:[%s710_s4] sm:$0xff]  ;;  %v505_v10 = vld [vmem:[%s714_s6 + $0x38] sm:$0xff] }
   0x4   :  { %v488_v8 = vld [vmem:[%s712_s0] sm:$0xff]  ;;  %245 = vmatpush.bf16.msra.mxu2 %v505_v10  ;;  %v504_v12 = vld [vmem:[%s714_s6 + $0x30] sm:$0xff]  ;;  %v503_v13 = vld [vmem:[%s714_s6 + $0x28] sm:$0xff] }
   0x5   :  { %v130_v9 = vld [vmem:[%s713_s3] sm:$0xff]  ;;  %v131_v14 = vld [vmem:[%s713_s3 + $0x8] sm:$0xff]  ;;  %v501_v25 = vld [vmem:[%s714_s6 + $0x18] sm:$0xff] }
   0x6   :  { %115 = vmatpush.bf16.msra.mxu0 %v495_v1  ;;  %160 = vperm.xlu0 %524, %v130_v9   ;;  %v525_v16 = vld [vmem:[%s711_s5] ss:$0 sm:$0xff]  ;;  %v500_v26 = vld [vmem:[%s714_s6 + $0x10] sm:$0xff]  ;;  %v499_v27 = vld [vmem:[%s714_s6 + $0x8] sm:$0xff] }
   0x7   :  { %v497_v23 = vld [vmem:[%s715_s2] sm:$0xff]  ;;  %v513_v29 = vld [vmem:[%s717_s8 + $0x38] sm:$0xff]  ;;  %v512_v30 = vld [vmem:[%s717_s8 + $0x30] sm:$0xff] }
   0x8   :  { %246 = vmatpush.bf16.msra.mxu2 %v504_v12  ;;  %v502_v24 = vld [vmem:[%s714_s6 + $0x20] sm:$0xff]  ;;  %339 = vmatpush.bf16.msra.mxu3 %v513_v29  ;;  %v511_v43 = vld [vmem:[%s717_s8 + $0x28] sm:$0xff]  ;;  %v509_v45 = vld [vmem:[%s717_s8 + $0x18] sm:$0xff] }
   0x9   :  { %v498_v28 = vld [vmem:[%s714_s6] sm:$0xff]  ;;  %v508_v46 = vld [vmem:[%s717_s8 + $0x10] sm:$0xff]  ;;  %v507_v47 = vld [vmem:[%s717_s8 + $0x8] sm:$0xff] }
   0xa   :  { %116 = vmatpush.bf16.msra.mxu0 %v494_v2  ;;  %v515_v33 = vld [vmem:[%s718_s1] sm:$0xff]  }
   0xb   :  { %v516_v35 = vunpack.c.l.bf16 %v515_v33  ;;  %v517_v36 = vunpack.c.h.bf16 %v515_v33  ;;  %v510_v44 = vld [vmem:[%s717_s8 + $0x20] sm:$0xff] }
   0xc   :  { %247 = vmatpush.bf16.msra.mxu2 %v503_v13  ;;  %340 = vmatpush.bf16.msra.mxu3 %v512_v30  ;;  %v506_v48 = vld [vmem:[%s717_s8] sm:$0xff] }
   0xd   :  { %v526_v49 = vld [vmem:[%s716_s7] ss:$0 sm:$0xff] }
   0xe   :  { %117 = vmatpush.bf16.msra.mxu0 %v493_v3  ;;  %165 = vperm.xlu0 %524, %v131_v14   ;;  %v527_v62 = vld [vmem:[%s719_s9] ss:$0 sm:$0xff] }
  0x10   :  { %248 = vmatpush.bf16.msra.mxu2 %v502_v24  ;;  %341 = vmatpush.bf16.msra.mxu3 %v511_v43 }
  0x12   :  { %118 = vmatpush.bf16.msra.mxu0 %v492_v4 }
  0x14   :  { %249 = vmatpush.bf16.msra.mxu2 %v501_v25  ;;  %342 = vmatpush.bf16.msra.mxu3 %v510_v44 }
  0x16   :  { %119 = vmatpush.bf16.msra.mxu0 %v491_v5 }
  0x18   :  { %250 = vmatpush.bf16.msra.mxu2 %v500_v26  ;;  %343 = vmatpush.bf16.msra.mxu3 %v509_v45 }
  0x1a   :  { %120 = vmatpush.bf16.msra.mxu0 %v490_v6 }
  0x1c   :  { %251 = vmatpush.bf16.msra.mxu2 %v499_v27  ;;  %344 = vmatpush.bf16.msra.mxu3 %v508_v46 }
  0x1e   :  { %121 = vmatpush.bf16.msra.mxu0 %v489_v7 }
  0x20   :  { %252 = vmatpush.bf16.msra.mxu2 %v498_v28  ;;  %345 = vmatpush.bf16.msra.mxu3 %v507_v47 }
  0x21   :  { %122 = vmatmul.bf16.vlgmr.msra.gmra.mxu0 %v488_v8 }
  0x24   :  { %346 = vmatpush.bf16.msra.mxu3 %v506_v48 }
  0x78   :  { %v161_v31 = vpop.permute.xlu0 %160 }
  0x80   :  { %v166_v37 = vpop.permute.xlu0 %165 }
  0x9e   :  { %v123_v15 = vpop.f32.mrf.mxu0 }
  0x9f   :  { %v124_v17 = vadd.f32 %v525_v16, %v123_v15 }
  0xa1   :  { %528 = vtanh.f32 %v124_v17 }
  0xa6   :  { %v125_v18 = vpop.f32.mrf.mxu0 }
  0xa7   :  { %v126_v19 = vadd.f32 %v525_v16, %v125_v18  ;;  %v529_v20 = vpop.eup %528 }
  0xa9   :  { %530 = vtanh.f32 %v126_v19 }
  0xaf   :  { %v531_v21 = vpop.eup %530 }
  0xb0   :  { %v134_v22 = vpack.c.bf16 %v531_v21, %v529_v20 }
  0xb2   :  { %151 = vmatpush.bf16.msra.mxu1 %v134_v22 }
  0xb5   :  { %423 = vmatmul.msk.bf16.vlgmr.msra.gmra.mxu1 %vm140_vm0, %v497_v23 }
 0x132   :  { %v153_v32 = vpop.f32.mrf.mxu1 }
 0x133   :  { %v168_v34 = vmul.f32 %v161_v31, %v153_v32 }
 0x135   :  { %v174_v40 = vadd.f32 %v516_v35, %v168_v34 }
 0x13a   :  { %v155_v38 = vpop.f32.mrf.mxu1 }
 0x13b   :  { %v169_v39 = vmul.f32 %v166_v37, %v155_v38 }
 0x13d   :  { %v175_v41 = vadd.f32 %v517_v36, %v169_v39 }
 0x13f   :  { %v176_v42 = vpack.c.bf16 %v175_v41, %v174_v40 }
 0x141   :  { %253 = vmatmul.bf16.vlgmr.msra.gmra.mxu2 %v176_v42 }
 0x1c4   :  { %v254_v50 = vpop.f32.mrf.mxu2 }
 0x1c5   :  { %v255_v51 = vadd.f32 %v526_v49, %v254_v50 }
 0x1c7   :  { %532 = vtanh.f32 %v255_v51 }
 0x1cc   :  { %v256_v52 = vpop.f32.mrf.mxu2 }
 0x1cd   :  { %v257_v53 = vadd.f32 %v526_v49, %v256_v52  ;;  %v533_v54 = vpop.eup %532 }
 0x1ce   :  { %v261_v55 = vpack.c.bf16 %v533_v54, %v533_v54 }
 0x1cf   :  { %534 = vtanh.f32 %v257_v53 }
 0x1d0   :  { %v287_v59 = vunpack.c.l.b16 %v261_v55 }
 0x1d5   :  { %v535_v56 = vpop.eup %534 }
 0x1d6   :  { %v521_v57 = vpack.c.bf16 %v535_v56, %v533_v54  ;;  %v262_v58 = vpack.c.bf16 %v535_v56, %v535_v56 }
 0x1d8   :  { %522 = vst [vmem:[%s720_s10] sm:$0xff] %v521_v57   ;;  %v288_v60 = vunpack.c.l.b16 %v262_v58 }
 0x1da   :  { %v289_v61 = vpack.c.b16 %v288_v60, %v287_v59 }
 0x1dc   :  { %347 = vmatmul.bf16.vlgmr.msra.gmra.mxu3 %v289_v61 }
 0x25f   :  { %v348_v63 = vpop.f32.mrf.mxu3 }
 0x260   :  { %v349_v0 = vadd.f32 %v527_v62, %v348_v63 }
 0x262   :  { %353 = vmax.xlane.f32.xlu1 %v349_v0 }
 0x267   :  { %v350_v1 = vpop.f32.mrf.mxu3 }
 0x268   :  { %v351_v2 = vadd.f32 %v527_v62, %v350_v1 }
 0x26a   :  { %355 = vmax.xlane.f32.xlu1 %v351_v2 }
 0x2d5   :  { %v354_v3 = vpop.xlane.xlu1 %353 }
 0x2d6   :  { %v357_v4 = vsub.f32 %v349_v0, %v354_v3 }
 0x2d8   :  { %v359_v5 = vmul.f32 1.442695, %v357_v4 }
 0x2da   :  { %536 = vpow2.f32 %v359_v5 }
 0x2dd   :  { %v356_v6 = vpop.xlane.xlu1 %355 }
 0x2de   :  { %v358_v7 = vsub.f32 %v351_v2, %v356_v6 }
 0x2e0   :  { %v537_v8 = vpop.eup %536  ;;  %v361_v9 = vmul.f32 1.442695, %v358_v7 }
 0x2e1   :  { %363 = vadd.xlane.f32.xlu2 %v537_v8 }
 0x2e2   :  { %538 = vpow2.f32 %v361_v9 }
 0x2e8   :  { %v539_v10 = vpop.eup %538 }
 0x2e9   :  { %365 = vadd.xlane.f32.xlu2 %v539_v10 }
 0x354   :  { %v364_v11 = vpop.xlane.xlu2 %363 }
 0x355   :  { %540 = vlog2.f32 %v364_v11 }
 0x35b   :  { %v541_v12 = vpop.eup %540 }
 0x35c   :  { %v368_v13 = vmul.f32 0.6931472, %v541_v12  ;;  %v366_v14 = vpop.xlane.xlu2 %365 }
 0x35d   :  { %542 = vlog2.f32 %v366_v14 }
 0x35e   :  { %v371_v15 = vsub.f32 %v357_v4, %v368_v13 }
 0x360   :  { %373 = vst [vmem:[%s721_s11] sm:$0xff] %v371_v15 }
 0x363   :  { %v543_v16 = vpop.eup %542 }
 0x364   :  { %v370_v17 = vmul.f32 0.6931472, %v543_v16 }
 0x366   :  { %v372_v18 = vsub.f32 %v358_v7, %v370_v17 }
 0x368   :  { %374 = vst [vmem:[%s721_s11 + $0x8] sm:$0xff] %v372_v18 }

</bundles_post_ra>
